<compile_context>
chip_gen: v6e
topology: v6e:2x2x1
jax: 0.10.0
libtpu: 0.0.40
codegen_flags: <defaults>
</compile_context>

<pallas_src>
import jax
import jax.numpy as jnp
from jax.experimental import pallas as pl
from jax.experimental.pallas import tpu as pltpu

LANE = 128


def _round_up(x: int, m: int) -> int:
    return (x + m - 1) // m * m


def _cdiv(a: int, b: int) -> int:
    return (a + b - 1) // b


def _softplus(x):
    # Matches torch.nn.Softplus(beta=1, threshold=20): linear for x > 20.
    return jnp.where(x > 20.0, x, jnp.log1p(jnp.exp(jnp.minimum(x, 20.0))))


def prepare_encode_z_params(hidden_params, loc_w, loc_b, sig_w, sig_b):
    """One-time packing of EncodeZ weights for the Pallas kernel.

    * Hidden-layer weights are zero-padded to 128-lane output widths (bf16),
      biases stay f32.  Rows of the *next* layer beyond the real fan_in are
      zero, so softplus(0)=log(2) in padded columns contributes nothing.
    * loc / sig heads are fused into one [hidden_pad, 2*round_up(D,128)] slab
      packed as [loc | pad | sig | pad] so exp can run on a lane-aligned slice.
    """
    hidden = []
    prev_pad = None
    for (w, b) in hidden_params:
        w = jnp.asarray(w, jnp.float32)
        b = jnp.asarray(b, jnp.float32).reshape(1, -1)
        fan_in, fan_out = int(w.shape[0]), int(w.shape[1])
        in_pad = fan_in if prev_pad is None else prev_pad
        out_pad = _round_up(fan_out, LANE)
        wp = jnp.zeros((in_pad, out_pad), jnp.float32)
        wp = wp.at[:fan_in, :fan_out].set(w)          # padded rows stay zero
        bp = jnp.zeros((1, out_pad), jnp.float32).at[:, :fan_out].set(b)
        hidden.append((wp.astype(jnp.bfloat16), bp))
        prev_pad = out_pad

    loc_w = jnp.asarray(loc_w, jnp.float32)
    sig_w = jnp.asarray(sig_w, jnp.float32)
    hidden_last, out_dim = int(loc_w.shape[0]), int(loc_w.shape[1])
    half_pad = _round_up(out_dim, LANE)
    w_heads = jnp.zeros((prev_pad, 2 * half_pad), jnp.float32)
    w_heads = w_heads.at[:hidden_last, :out_dim].set(loc_w)
    w_heads = w_heads.at[:hidden_last, half_pad:half_pad + out_dim].set(sig_w)
    b_heads = jnp.zeros((1, 2 * half_pad), jnp.float32)
    b_heads = b_heads.at[:, :out_dim].set(
        jnp.asarray(loc_b, jnp.float32).reshape(1, -1))
    b_heads = b_heads.at[:, half_pad:half_pad + out_dim].set(
        jnp.asarray(sig_b, jnp.float32).reshape(1, -1))

    return {
        "hidden": hidden,
        "w_heads": w_heads.astype(jnp.bfloat16),
        "b_heads": b_heads,
        "input_dim": int(hidden_params[0][0].shape[0]),
        "output_dim": out_dim,
        "half_pad": int(half_pad),
    }


def _make_encode_z_kernel(n_hidden: int, transform, half_pad: int, out_dtype):
    """Fused kernel: transform -> hidden MLP -> fused (loc | exp(sig)) head."""

    def kernel(*refs):
        x = refs[0][...]                       # bf16 [tile_b, input_dim]
        if transform == "log":
            x = jnp.log1p(x.astype(jnp.float32)).astype(jnp.bfloat16)
        elif transform == "normalize":
            xf = x.astype(jnp.float32)
            # Matches torch x / x.sum(-1, keepdim=True).  An all-zero row gives
            # inf/nan exactly like the reference module; rows are independent,
            # so ragged-block garbage rows never contaminate real rows.
            x = (xf / jnp.sum(xf, axis=-1, keepdims=True)).astype(jnp.bfloat16)

        h = x
        idx = 1
        for _ in range(n_hidden):
            w = refs[idx][...]                 # bf16 [in_pad, out_pad], resident
            b = refs[idx + 1][...]             # f32  [1, out_pad]
            idx += 2
            pre = jnp.dot(h, w, preferred_element_type=jnp.float32) + b
            h = _softplus(pre).astype(jnp.bfloat16)

        w_heads = refs[idx][...]               # bf16 [hidden_pad, 2*half_pad]
        b_heads = refs[idx + 1][...]           # f32  [1, 2*half_pad]
        out_ref = refs[idx + 2]                # bf16 [tile_b, 2*half_pad]
        head = jnp.dot(h, w_heads, preferred_element_type=jnp.float32) + b_heads
        # loc slab: identity.  sig slab: exp.  Both are 128-lane-aligned static
        # slices, so no iota/compare/select filler and no exp on the loc half.
        out_ref[:, :half_pad] = head[:, :half_pad].astype(out_dtype)
        out_ref[:, half_pad:] = jnp.exp(head[:, half_pad:]).astype(out_dtype)

    return kernel


def encode_z(x, params, transform=None, tile_b: int = 512):
    """Pallas-backed forward pass of EncodeZ.

    Args:
        x: array, any leading shape, last dim = input_dim (genes).
        params: output of prepare_encode_z_params (pre-packed bf16 weights).
        transform: None | 'log' | 'normalize'.
        tile_b: desired batch tile (auto-shrunk to the VMEM budget).

    Returns:
        {'loc': ..., 'scale': ...} (f32) with trailing size-1 dims squeezed.
    """
    if transform not in (None, "log", "normalize"):
        raise ValueError("transform must be one of None, 'log', 'normalize'")

    input_dim = params["input_dim"]
    output_dim = params["output_dim"]
    half_pad = params["half_pad"]
    n_pad = 2 * half_pad
    hidden = params["hidden"]
    w_heads, b_heads = params["w_heads"], params["b_heads"]
    out_dtype = jnp.bfloat16

    # Stream x in bf16: halves HBM traffic on the dominant input stream.
    x2 = jnp.asarray(x).reshape(-1, input_dim).astype(jnp.bfloat16)
    batch = int(x2.shape[0])

    flat_params = []
    for (w, b) in hidden:
        flat_params += [w, b]
    flat_params += [w_heads, b_heads]
    weight_bytes = sum(int(a.size) * a.dtype.itemsize for a in flat_params)
    out_pads = [int(w.shape[1]) for (w, _) in hidden]

    # ---- generation-aware VMEM budget and batch tile ------------------------
    try:
        vmem_capacity = int(pltpu.get_tpu_info().vmem_capacity_bytes)
    except Exception:
        vmem_capacity = 64 * 1024 * 1024      # conservative (v7x per-TensorCore)
    budget = int(0.85 * vmem_capacity)        # leave headroom for Mosaic scratch

    per_row = (2 * input_dim * 2              # double-buffered bf16 x tile
               + 2 * n_pad * 2                # double-buffered bf16 out tile
               + 4 * (input_dim + sum(out_pads) + n_pad)  # f32 intermediates
               + 2 * sum(out_pads))           # bf16 activation copies
    # TODO(synk): if the resident first-layer weight alone blows the budget
    # (huge gene counts on v7x's 64 MiB VMEM), K-tile the gene axis with an
    # 'arbitrary' grid dim and accumulate x@W0 (and the 'normalize' row sum)
    # across K blocks before bias+softplus.
    tile_cap = max(16, (budget - 2 * weight_bytes - (2 << 20)) // per_row)
    tile_b_eff = max(16, min(tile_b, tile_cap, 2048))

    if batch <= tile_b_eff:
        tile_b_eff = batch                    # single full block, no padding
    elif tile_b_eff >= 128:
        tile_b_eff = tile_b_eff // 128 * 128  # lane/sublane-friendly multiples
    else:
        tile_b_eff = tile_b_eff // 16 * 16
    n_tiles = _cdiv(batch, tile_b_eff)
    if n_tiles == 1 and batch > 32:
        # Give v7x's two TensorCores at least two parallel grid steps.
        tile_b_eff = _round_up(_cdiv(batch, 2), 16)
        n_tiles = _cdiv(batch, tile_b_eff)

    est_use = (2 * weight_bytes
               + 2 * tile_b_eff * (input_dim * 2 + n_pad * 2)
               + tile_b_eff * 4 * (input_dim + sum(out_pads) + n_pad))
    vmem_limit = int(min(budget, max(32 * 1024 * 1024, int(1.4 * est_use))))

    # ---- cost estimate (advisory) -------------------------------------------
    flops_row = 0
    trans_row = 0
    for (w, _) in hidden:
        flops_row += 2 * int(w.shape[0]) * int(w.shape[1])
        trans_row += 2 * int(w.shape[1])      # softplus = exp + log1p
    flops_row += 2 * int(w_heads.shape[0]) * int(w_heads.shape[1])
    trans_row += half_pad                     # exp on the sig slab only
    if transform == "log":
        trans_row += input_dim
    cost = pl.CostEstimate(
        flops=int(flops_row * batch),
        transcendentals=int(trans_row * batch),
        bytes_accessed=int(batch * input_dim * 2 + weight_bytes
                           + batch * n_pad * 2),
    )

    kernel = _make_encode_z_kernel(len(hidden), transform, half_pad, out_dtype)
    x_spec = pl.BlockSpec((tile_b_eff, input_dim), lambda i: (i, 0))
    out_spec = pl.BlockSpec((tile_b_eff, n_pad), lambda i: (i, 0))

    def _run(single_buffer_weights: bool):
        def const_spec(shape):
            if single_buffer_weights:
                # Constant index_map -> fetched once; 1 buffer halves resident
                # weight VMEM (double-buffering buys nothing here).
                return pl.BlockSpec(shape, lambda i: (0, 0),
                                    pipeline_mode=pl.Buffered(1))
            return pl.BlockSpec(shape, lambda i: (0, 0))

        in_specs = [x_spec] + [const_spec(p.shape) for p in flat_params]
        return pl.pallas_call(
            kernel,
            grid=(n_tiles,),
            out_shape=jax.ShapeDtypeStruct((batch, n_pad), out_dtype),
            in_specs=in_specs,
            out_specs=out_spec,
            compiler_params=pltpu.CompilerParams(
                dimension_semantics=("parallel",),
                vmem_limit_bytes=vmem_limit,
            ),
            cost_estimate=cost,
        )(x2, *flat_params)

    try:
        combined = _run(single_buffer_weights=True)
    except Exception:
        # pipeline_mode=Buffered(1) unsupported on this build; default
        # double-buffered (still fetch-once) constant blocks are a safe fallback.
        combined = _run(single_buffer_weights=False)

    loc = combined[:, :output_dim].astype(jnp.float32)
    scale = combined[:, half_pad:half_pad + output_dim].astype(jnp.float32)

    # torch .squeeze() removes all size-1 dims
    return {"loc": jnp.squeeze(loc), "scale": jnp.squeeze(scale)}


def _init_linear(key, fan_in, fan_out):
    """Deterministic init mimicking torch.nn.Linear (uniform +/- 1/sqrt(fan_in))."""
    kw, kb = jax.random.split(key)
    bound = 1.0 / jnp.sqrt(jnp.float32(fan_in))
    w = jax.random.uniform(kw, (fan_in, fan_out), jnp.float32, -bound, bound)
    b = jax.random.uniform(kb, (fan_out,), jnp.float32, -bound, bound)
    return w, b


if __name__ == "__main__":
    # Small shapes consistent with EncodeZ: genes=128, hidden_dims=[64, 32], latent=16
    batch = 8
    input_dim = 128
    hidden_dims = [64, 32]
    output_dim = 16
    transform = "log"

    key = jax.random.PRNGKey(0)
    k_x, k0, k1, k_loc, k_sig = jax.random.split(key, 5)

    # Nonnegative "count-like" input (gene expression counts), exact in bf16.
    x = jnp.floor(jax.random.uniform(k_x, (batch, input_dim), jnp.float32) * 10.0)

    w0, b0 = _init_linear(k0, input_dim, hidden_dims[0])
    w1, b1 = _init_linear(k1, hidden_dims[0], hidden_dims[1])
    loc_w, loc_b = _init_linear(k_loc, hidden_dims[1], output_dim)
    sig_w, sig_b = _init_linear(k_sig, hidden_dims[1], output_dim)

    # One-time weight packing (hoisted out of the per-call path).
    params = prepare_encode_z_params(
        [(w0, b0), (w1, b1)], loc_w, loc_b, sig_w, sig_b)

    out = encode_z(x, params, transform=transform)
    jax.block_until_ready(out)

    # --- Reference 1: mirror the kernel's bf16-matmul / f32-accumulate math ---
    def _dot_bf16(a, b):
        return jnp.dot(a.astype(jnp.bfloat16), b.astype(jnp.bfloat16),
                       preferred_element_type=jnp.float32)

    xr = jnp.log1p(x)
    h = _softplus(_dot_bf16(xr, w0) + b0)
    h = _softplus(_dot_bf16(h, w1) + b1)
    loc_ref_bf = _dot_bf16(h, loc_w) + loc_b
    scale_ref_bf = jnp.exp(_dot_bf16(h, sig_w) + sig_b)
    # Kernel output is bf16 -> allow bf16 rounding slack (~0.4% relative).
    assert jnp.allclose(out["loc"], loc_ref_bf, atol=1e-2, rtol=1e-2), "loc (bf16 ref)"
    assert jnp.allclose(out["scale"], scale_ref_bf, atol=1e-2, rtol=1e-2), "scale (bf16 ref)"

    # --- Reference 2: full f32 math (looser tolerance for bf16 matmuls) ---
    h32 = _softplus(xr @ w0 + b0)
    h32 = _softplus(h32 @ w1 + b1)
    loc_ref = h32 @ loc_w + loc_b
    scale_ref = jnp.exp(h32 @ sig_w + sig_b)
    assert jnp.allclose(out["loc"], loc_ref, atol=5e-2, rtol=5e-2), "loc (f32 ref)"
    assert jnp.allclose(out["scale"], scale_ref, atol=5e-2, rtol=5e-2), "scale (f32 ref)"

    print("KERNEL_OK")
</pallas_src>

<mosaic_0001>
module attributes {stable_mosaic.version = 11 : i64} {
  func.func @kernel(%arg0: i32, %arg1: memref<8x128xbf16, #tpu.memory_space<vmem>>, %arg2: memref<128x128xbf16, #tpu.memory_space<vmem>>, %arg3: memref<1x128xf32, #tpu.memory_space<vmem>>, %arg4: memref<128x128xbf16, #tpu.memory_space<vmem>>, %arg5: memref<1x128xf32, #tpu.memory_space<vmem>>, %arg6: memref<128x256xbf16, #tpu.memory_space<vmem>>, %arg7: memref<1x256xf32, #tpu.memory_space<vmem>>, %arg8: memref<8x256xbf16, #tpu.memory_space<vmem>>) attributes {dimension_semantics = [#tpu.dimension_semantics<parallel>], iteration_bounds = array<i64: 1>, scalar_prefetch = 0 : i64, scratch_operands = 0 : i64, tpu.core_type = #tpu.core_type<tc>, window_params = [{transform_indices = @transform_0, window_bounds = array<i64: 8, 128>}, {pipeline_mode = #tpu.pipeline_mode<synchronous>, transform_indices = @transform_1, window_bounds = array<i64: 128, 128>}, {pipeline_mode = #tpu.pipeline_mode<synchronous>, transform_indices = @transform_2, window_bounds = array<i64: 1, 128>}, {pipeline_mode = #tpu.pipeline_mode<synchronous>, transform_indices = @transform_3, window_bounds = array<i64: 128, 128>}, {pipeline_mode = #tpu.pipeline_mode<synchronous>, transform_indices = @transform_4, window_bounds = array<i64: 1, 128>}, {pipeline_mode = #tpu.pipeline_mode<synchronous>, transform_indices = @transform_5, window_bounds = array<i64: 128, 256>}, {pipeline_mode = #tpu.pipeline_mode<synchronous>, transform_indices = @transform_6, window_bounds = array<i64: 1, 256>}, {transform_indices = @transform_7, window_bounds = array<i64: 8, 256>}]} {
    %c0 = arith.constant 0 : index
    %c0_0 = arith.constant 0 : index
    %0 = vector.load %arg1[%c0, %c0_0] : memref<8x128xbf16, #tpu.memory_space<vmem>>, vector<8x128xbf16>
    %1 = arith.extf %0 : vector<8x128xbf16> to vector<8x128xf32>
    %2 = math.log1p %1 : vector<8x128xf32>
    %3 = arith.truncf %2 : vector<8x128xf32> to vector<8x128xbf16>
    %c0_1 = arith.constant 0 : index
    %c0_2 = arith.constant 0 : index
    %4 = vector.load %arg2[%c0_1, %c0_2] : memref<128x128xbf16, #tpu.memory_space<vmem>>, vector<128x128xbf16>
    %c0_3 = arith.constant 0 : index
    %c0_4 = arith.constant 0 : index
    %5 = vector.load %arg3[%c0_3, %c0_4] : memref<1x128xf32, #tpu.memory_space<vmem>>, vector<1x128xf32>
    %cst = arith.constant dense<0.000000e+00> : vector<8x128xf32>
    %6 = tpu.matmul %3, %4, %cst {dimension_numbers = #tpu.dot_dimension_numbers<[1], [0], [0], [1], [0, 0, 1, 1], [], []>} : vector<8x128xbf16>, vector<128x128xbf16>, vector<8x128xf32> -> vector<8x128xf32>
    %7 = vector.broadcast %5 : vector<1x128xf32> to vector<8x128xf32>
    %8 = arith.addf %6, %7 : vector<8x128xf32>
    %cst_5 = arith.constant 2.000000e+01 : f32
    %9 = vector.broadcast %cst_5 : f32 to vector<8x128xf32>
    %10 = arith.cmpf ogt, %8, %9 : vector<8x128xf32>
    %cst_6 = arith.constant 2.000000e+01 : f32
    %11 = vector.broadcast %cst_6 : f32 to vector<8x128xf32>
    %12 = arith.minimumf %8, %11 : vector<8x128xf32>
    %13 = math.exp %12 : vector<8x128xf32>
    %14 = math.log1p %13 : vector<8x128xf32>
    %15 = arith.select %10, %8, %14 : vector<8x128xi1>, vector<8x128xf32>
    %16 = arith.truncf %15 : vector<8x128xf32> to vector<8x128xbf16>
    %c0_7 = arith.constant 0 : index
    %c0_8 = arith.constant 0 : index
    %17 = vector.load %arg4[%c0_7, %c0_8] : memref<128x128xbf16, #tpu.memory_space<vmem>>, vector<128x128xbf16>
    %c0_9 = arith.constant 0 : index
    %c0_10 = arith.constant 0 : index
    %18 = vector.load %arg5[%c0_9, %c0_10] : memref<1x128xf32, #tpu.memory_space<vmem>>, vector<1x128xf32>
    %cst_11 = arith.constant dense<0.000000e+00> : vector<8x128xf32>
    %19 = tpu.matmul %16, %17, %cst_11 {dimension_numbers = #tpu.dot_dimension_numbers<[1], [0], [0], [1], [0, 0, 1, 1], [], []>} : vector<8x128xbf16>, vector<128x128xbf16>, vector<8x128xf32> -> vector<8x128xf32>
    %20 = vector.broadcast %18 : vector<1x128xf32> to vector<8x128xf32>
    %21 = arith.addf %19, %20 : vector<8x128xf32>
    %cst_12 = arith.constant 2.000000e+01 : f32
    %22 = vector.broadcast %cst_12 : f32 to vector<8x128xf32>
    %23 = arith.cmpf ogt, %21, %22 : vector<8x128xf32>
    %cst_13 = arith.constant 2.000000e+01 : f32
    %24 = vector.broadcast %cst_13 : f32 to vector<8x128xf32>
    %25 = arith.minimumf %21, %24 : vector<8x128xf32>
    %26 = math.exp %25 : vector<8x128xf32>
    %27 = math.log1p %26 : vector<8x128xf32>
    %28 = arith.select %23, %21, %27 : vector<8x128xi1>, vector<8x128xf32>
    %29 = arith.truncf %28 : vector<8x128xf32> to vector<8x128xbf16>
    %c0_14 = arith.constant 0 : index
    %c0_15 = arith.constant 0 : index
    %30 = vector.load %arg6[%c0_14, %c0_15] : memref<128x256xbf16, #tpu.memory_space<vmem>>, vector<128x256xbf16>
    %c0_16 = arith.constant 0 : index
    %c0_17 = arith.constant 0 : index
    %31 = vector.load %arg7[%c0_16, %c0_17] : memref<1x256xf32, #tpu.memory_space<vmem>>, vector<1x256xf32>
    %cst_18 = arith.constant dense<0.000000e+00> : vector<8x256xf32>
    %32 = tpu.matmul %29, %30, %cst_18 {dimension_numbers = #tpu.dot_dimension_numbers<[1], [0], [0], [1], [0, 0, 1, 1], [], []>} : vector<8x128xbf16>, vector<128x256xbf16>, vector<8x256xf32> -> vector<8x256xf32>
    %33 = vector.broadcast %31 : vector<1x256xf32> to vector<8x256xf32>
    %34 = arith.addf %32, %33 : vector<8x256xf32>
    %35 = vector.extract_strided_slice %34 {offsets = [0, 0], sizes = [8, 128], strides = [1, 1]} : vector<8x256xf32> to vector<8x128xf32>
    %36 = arith.truncf %35 : vector<8x128xf32> to vector<8x128xbf16>
    %c0_19 = arith.constant 0 : index
    %c0_20 = arith.constant 0 : index
    %37 = vector.load %arg8[%c0_19, %c0_20] : memref<8x256xbf16, #tpu.memory_space<vmem>>, vector<8x128xbf16>
    tpu.vector_store %arg8[%c0_19, %c0_20], %36 {strides = array<i32>} : memref<8x256xbf16, #tpu.memory_space<vmem>>, vector<8x128xbf16>,
    %38 = vector.extract_strided_slice %34 {offsets = [0, 128], sizes = [8, 128], strides = [1, 1]} : vector<8x256xf32> to vector<8x128xf32>
    %39 = math.exp %38 : vector<8x128xf32>
    %40 = arith.truncf %39 : vector<8x128xf32> to vector<8x128xbf16>
    %c0_21 = arith.constant 0 : index
    %c128 = arith.constant 128 : index
    %41 = vector.load %arg8[%c0_21, %c128] : memref<8x256xbf16, #tpu.memory_space<vmem>>, vector<8x128xbf16>
    tpu.vector_store %arg8[%c0_21, %c128], %40 {strides = array<i32>} : memref<8x256xbf16, #tpu.memory_space<vmem>>, vector<8x128xbf16>,
    return
  }
  func.func @transform_0(%arg0: i32) -> (i32, i32) {
    %c0_i32 = arith.constant 0 : i32
    %c0_i32_0 = arith.constant 0 : i32
    return %arg0, %c0_i32 : i32, i32
  }
  func.func @transform_1(%arg0: i32) -> (i32, i32) {
    %c0_i32 = arith.constant 0 : i32
    %c0_i32_0 = arith.constant 0 : i32
    %c0_i32_1 = arith.constant 0 : i32
    return %c0_i32, %c0_i32_0 : i32, i32
  }
  func.func @transform_2(%arg0: i32) -> (i32, i32) {
    %c0_i32 = arith.constant 0 : i32
    %c0_i32_0 = arith.constant 0 : i32
    %c0_i32_1 = arith.constant 0 : i32
    return %c0_i32, %c0_i32_0 : i32, i32
  }
  func.func @transform_3(%arg0: i32) -> (i32, i32) {
    %c0_i32 = arith.constant 0 : i32
    %c0_i32_0 = arith.constant 0 : i32
    %c0_i32_1 = arith.constant 0 : i32
    return %c0_i32, %c0_i32_0 : i32, i32
  }
  func.func @transform_4(%arg0: i32) -> (i32, i32) {
    %c0_i32 = arith.constant 0 : i32
    %c0_i32_0 = arith.constant 0 : i32
    %c0_i32_1 = arith.constant 0 : i32
    return %c0_i32, %c0_i32_0 : i32, i32
  }
  func.func @transform_5(%arg0: i32) -> (i32, i32) {
    %c0_i32 = arith.constant 0 : i32
    %c0_i32_0 = arith.constant 0 : i32
    %c0_i32_1 = arith.constant 0 : i32
    return %c0_i32, %c0_i32_0 : i32, i32
  }
  func.func @transform_6(%arg0: i32) -> (i32, i32) {
    %c0_i32 = arith.constant 0 : i32
    %c0_i32_0 = arith.constant 0 : i32
    %c0_i32_1 = arith.constant 0 : i32
    return %c0_i32, %c0_i32_0 : i32, i32
  }
  func.func @transform_7(%arg0: i32) -> (i32, i32) {
    %c0_i32 = arith.constant 0 : i32
    %c0_i32_0 = arith.constant 0 : i32
    return %arg0, %c0_i32 : i32, i32
  }
}

module attributes {stable_mosaic.version = 11 : i64} {
  func.func @kernel(%arg0: i32, %arg1: memref<8x128xbf16, #tpu.memory_space<vmem>>, %arg2: memref<128x128xbf16, #tpu.memory_space<vmem>>, %arg3: memref<1x128xf32, #tpu.memory_space<vmem>>, %arg4: memref<128x128xbf16, #tpu.memory_space<vmem>>, %arg5: memref<1x128xf32, #tpu.memory_space<vmem>>, %arg6: memref<128x256xbf16, #tpu.memory_space<vmem>>, %arg7: memref<1x256xf32, #tpu.memory_space<vmem>>, %arg8: memref<8x256xbf16, #tpu.memory_space<vmem>>) attributes {dimension_semantics = [#tpu.dimension_semantics<parallel>], iteration_bounds = array<i64: 1>, scalar_prefetch = 0 : i64, scratch_operands = 0 : i64, tpu.core_type = #tpu.core_type<tc>, window_params = [{transform_indices = @transform_0, window_bounds = array<i64: 8, 128>}, {pipeline_mode = #tpu.pipeline_mode<synchronous>, transform_indices = @transform_1, window_bounds = array<i64: 128, 128>}, {pipeline_mode = #tpu.pipeline_mode<synchronous>, transform_indices = @transform_2, window_bounds = array<i64: 1, 128>}, {pipeline_mode = #tpu.pipeline_mode<synchronous>, transform_indices = @transform_3, window_bounds = array<i64: 128, 128>}, {pipeline_mode = #tpu.pipeline_mode<synchronous>, transform_indices = @transform_4, window_bounds = array<i64: 1, 128>}, {pipeline_mode = #tpu.pipeline_mode<synchronous>, transform_indices = @transform_5, window_bounds = array<i64: 128, 256>}, {pipeline_mode = #tpu.pipeline_mode<synchronous>, transform_indices = @transform_6, window_bounds = array<i64: 1, 256>}, {transform_indices = @transform_7, window_bounds = array<i64: 8, 256>}]} {
    %c0 = arith.constant 0 : index
    %c0_0 = arith.constant 0 : index
    %0 = vector.load %arg1[%c0, %c0_0] : memref<8x128xbf16, #tpu.memory_space<vmem>>, vector<8x128xbf16>
    %1 = arith.extf %0 : vector<8x128xbf16> to vector<8x128xf32>
    %2 = math.log1p %1 : vector<8x128xf32>
    %3 = arith.truncf %2 : vector<8x128xf32> to vector<8x128xbf16>
    %c0_1 = arith.constant 0 : index
    %c0_2 = arith.constant 0 : index
    %4 = vector.load %arg2[%c0_1, %c0_2] : memref<128x128xbf16, #tpu.memory_space<vmem>>, vector<128x128xbf16>
    %c0_3 = arith.constant 0 : index
    %c0_4 = arith.constant 0 : index
    %5 = vector.load %arg3[%c0_3, %c0_4] : memref<1x128xf32, #tpu.memory_space<vmem>>, vector<1x128xf32>
    %cst = arith.constant dense<0.000000e+00> : vector<8x128xf32>
    %6 = tpu.matmul %3, %4, %cst {dimension_numbers = #tpu.dot_dimension_numbers<[1], [0], [0], [1], [0, 0, 1, 1], [], []>} : vector<8x128xbf16>, vector<128x128xbf16>, vector<8x128xf32> -> vector<8x128xf32>
    %7 = vector.broadcast %5 : vector<1x128xf32> to vector<8x128xf32>
    %8 = arith.addf %6, %7 : vector<8x128xf32>
    %cst_5 = arith.constant 2.000000e+01 : f32
    %9 = vector.broadcast %cst_5 : f32 to vector<8x128xf32>
    %10 = arith.cmpf ogt, %8, %9 : vector<8x128xf32>
    %cst_6 = arith.constant 2.000000e+01 : f32
    %11 = vector.broadcast %cst_6 : f32 to vector<8x128xf32>
    %12 = arith.minimumf %8, %11 : vector<8x128xf32>
    %13 = math.exp %12 : vector<8x128xf32>
    %14 = math.log1p %13 : vector<8x128xf32>
    %15 = arith.select %10, %8, %14 : vector<8x128xi1>, vector<8x128xf32>
    %16 = arith.truncf %15 : vector<8x128xf32> to vector<8x128xbf16>
    %c0_7 = arith.constant 0 : index
    %c0_8 = arith.constant 0 : index
    %17 = vector.load %arg4[%c0_7, %c0_8] : memref<128x128xbf16, #tpu.memory_space<vmem>>, vector<128x128xbf16>
    %c0_9 = arith.constant 0 : index
    %c0_10 = arith.constant 0 : index
    %18 = vector.load %arg5[%c0_9, %c0_10] : memref<1x128xf32, #tpu.memory_space<vmem>>, vector<1x128xf32>
    %cst_11 = arith.constant dense<0.000000e+00> : vector<8x128xf32>
    %19 = tpu.matmul %16, %17, %cst_11 {dimension_numbers = #tpu.dot_dimension_numbers<[1], [0], [0], [1], [0, 0, 1, 1], [], []>} : vector<8x128xbf16>, vector<128x128xbf16>, vector<8x128xf32> -> vector<8x128xf32>
    %20 = vector.broadcast %18 : vector<1x128xf32> to vector<8x128xf32>
    %21 = arith.addf %19, %20 : vector<8x128xf32>
    %cst_12 = arith.constant 2.000000e+01 : f32
    %22 = vector.broadcast %cst_12 : f32 to vector<8x128xf32>
    %23 = arith.cmpf ogt, %21, %22 : vector<8x128xf32>
    %cst_13 = arith.constant 2.000000e+01 : f32
    %24 = vector.broadcast %cst_13 : f32 to vector<8x128xf32>
    %25 = arith.minimumf %21, %24 : vector<8x128xf32>
    %26 = math.exp %25 : vector<8x128xf32>
    %27 = math.log1p %26 : vector<8x128xf32>
    %28 = arith.select %23, %21, %27 : vector<8x128xi1>, vector<8x128xf32>
    %29 = arith.truncf %28 : vector<8x128xf32> to vector<8x128xbf16>
    %c0_14 = arith.constant 0 : index
    %c0_15 = arith.constant 0 : index
    %30 = vector.load %arg6[%c0_14, %c0_15] : memref<128x256xbf16, #tpu.memory_space<vmem>>, vector<128x256xbf16>
    %c0_16 = arith.constant 0 : index
    %c0_17 = arith.constant 0 : index
    %31 = vector.load %arg7[%c0_16, %c0_17] : memref<1x256xf32, #tpu.memory_space<vmem>>, vector<1x256xf32>
    %cst_18 = arith.constant dense<0.000000e+00> : vector<8x256xf32>
    %32 = tpu.matmul %29, %30, %cst_18 {dimension_numbers = #tpu.dot_dimension_numbers<[1], [0], [0], [1], [0, 0, 1, 1], [], []>} : vector<8x128xbf16>, vector<128x256xbf16>, vector<8x256xf32> -> vector<8x256xf32>
    %33 = vector.broadcast %31 : vector<1x256xf32> to vector<8x256xf32>
    %34 = arith.addf %32, %33 : vector<8x256xf32>
    %35 = vector.extract_strided_slice %34 {offsets = [0, 0], sizes = [8, 128], strides = [1, 1]} : vector<8x256xf32> to vector<8x128xf32>
    %36 = arith.truncf %35 : vector<8x128xf32> to vector<8x128xbf16>
    %c0_19 = arith.constant 0 : index
    %c0_20 = arith.constant 0 : index
    %37 = vector.load %arg8[%c0_19, %c0_20] : memref<8x256xbf16, #tpu.memory_space<vmem>>, vector<8x128xbf16>
    tpu.vector_store %arg8[%c0_19, %c0_20], %36 {strides = array<i32>} : memref<8x256xbf16, #tpu.memory_space<vmem>>, vector<8x128xbf16>,
    %38 = vector.extract_strided_slice %34 {offsets = [0, 128], sizes = [8, 128], strides = [1, 1]} : vector<8x256xf32> to vector<8x128xf32>
    %39 = math.exp %38 : vector<8x128xf32>
    %40 = arith.truncf %39 : vector<8x128xf32> to vector<8x128xbf16>
    %c0_21 = arith.constant 0 : index
    %c128 = arith.constant 128 : index
    %41 = vector.load %arg8[%c0_21, %c128] : memref<8x256xbf16, #tpu.memory_space<vmem>>, vector<8x128xbf16>
    tpu.vector_store %arg8[%c0_21, %c128], %40 {strides = array<i32>} : memref<8x256xbf16, #tpu.memory_space<vmem>>, vector<8x128xbf16>,
    return
  }
  func.func @transform_0(%arg0: i32) -> (i32, i32) {
    %c0_i32 = arith.constant 0 : i32
    %c0_i32_0 = arith.constant 0 : i32
    return %arg0, %c0_i32 : i32, i32
  }
  func.func @transform_1(%arg0: i32) -> (i32, i32) {
    %c0_i32 = arith.constant 0 : i32
    %c0_i32_0 = arith.constant 0 : i32
    %c0_i32_1 = arith.constant 0 : i32
    return %c0_i32, %c0_i32_0 : i32, i32
  }
  func.func @transform_2(%arg0: i32) -> (i32, i32) {
    %c0_i32 = arith.constant 0 : i32
    %c0_i32_0 = arith.constant 0 : i32
    %c0_i32_1 = arith.constant 0 : i32
    return %c0_i32, %c0_i32_0 : i32, i32
  }
  func.func @transform_3(%arg0: i32) -> (i32, i32) {
    %c0_i32 = arith.constant 0 : i32
    %c0_i32_0 = arith.constant 0 : i32
    %c0_i32_1 = arith.constant 0 : i32
    return %c0_i32, %c0_i32_0 : i32, i32
  }
  func.func @transform_4(%arg0: i32) -> (i32, i32) {
    %c0_i32 = arith.constant 0 : i32
    %c0_i32_0 = arith.constant 0 : i32
    %c0_i32_1 = arith.constant 0 : i32
    return %c0_i32, %c0_i32_0 : i32, i32
  }
  func.func @transform_5(%arg0: i32) -> (i32, i32) {
    %c0_i32 = arith.constant 0 : i32
    %c0_i32_0 = arith.constant 0 : i32
    %c0_i32_1 = arith.constant 0 : i32
    return %c0_i32, %c0_i32_0 : i32, i32
  }
  func.func @transform_6(%arg0: i32) -> (i32, i32) {
    %c0_i32 = arith.constant 0 : i32
    %c0_i32_0 = arith.constant 0 : i32
    %c0_i32_1 = arith.constant 0 : i32
    return %c0_i32, %c0_i32_0 : i32, i32
  }
  func.func @transform_7(%arg0: i32) -> (i32, i32) {
    %c0_i32 = arith.constant 0 : i32
    %c0_i32_0 = arith.constant 0 : i32
    return %arg0, %c0_i32 : i32, i32
  }
}

</mosaic_0001>

<bundles_post_ra>
// kernel: tpu_custom_call.1
= control target key start
LH: loop header
LB: loop body
LE: loop exit
PB: predicated region body
PF: predicated region fallthrough
CT: control target
= control target key end

     0   :  { %12 = vsyncpa [#allocation3], 0  ;;  %s880_s0 = inlined_call_operand.hbm [shape: bf16[8,128], index: 0, kind: input, shape index: {}]   ;;  %s881_s1 = inlined_call_operand.hbm [shape: bf16[128,128], index: 1, kind: input, shape index: {}]   ;;  %s882_s2 = inlined_call_operand.vmem [shape: f32[1,128], index: 2, kind: input, shape index: {}]   ;;  %s883_s3 = inlined_call_operand.hbm [shape: bf16[128,128], index: 3, kind: input, shape index: {}]   ;;  %s884_s4 = inlined_call_operand.vmem [shape: f32[1,128], index: 4, kind: input, shape index: {}]   ;;  %s885_s5 = inlined_call_operand.hbm [shape: bf16[128,256], index: 5, kind: input, shape index: {}]   ;;  %s886_s6 = inlined_call_operand.vmem [shape: f32[1,256], index: 6, kind: input, shape index: {}]   ;;  %s887_s7 = inlined_call_operand.hbm [shape: bf16[8,256], index: 7, kind: output, shape index: {}]  }
   0x1   :  { %13 = vsyncpa [#allocation6], 0 }
   0x2   :  { %14 = vsyncpa [#allocation9], 0 }
   0x3   :  { %15 = vsyncpa [#allocation4], 0  ;;  %s786_s24 = smov [#allocation5]  }
   0x4   :  { %s31_s25 = sshll.u32 %s786_s24, 4  ;;  %s32_s25 = int_to_ptr.vmem [resolvable:$true] %s31_s25 }
   0x5   :  { %s686_s26 = scalar_lea.vmem %s32_s25, 1024  ;;  %p691_p1 = scmp.lt.s32.totalorder %s32_s25, %s32_s25 }
   0x6   :  { %p687_p0 = scmp.ne.s32.totalorder %s32_s25, %s686_s26  ;;  %p692_p2 = scmp.lt.s32.totalorder %s686_s26, %s686_s26 }
   0x8   :  { %p693_p3 = por %p692_p2, %p691_p1 }
   0xa   :  { %p694_p4 = pnand %p693_p3, %p687_p0 }
   0xc   :  { %697 = shalt.err (!%p694_p4)
}
   0xd   :  { %s787_s27 = smov 64   ;;  %s788_s28 = smov 4  }
   0xe   :  { %37 = dma.hbm_to_vmem [thread:$0]  %s881_s1, 1024, %s32_s25, [#allocation6], %s787_s27, %s787_s27, %s788_s28  }
   0xf   :  { %s789_s8 = smov [#allocation2]   ;;  %s790_s10 = smov [#allocation7]  }
  0x10   :  { %s22_s9 = sshll.u32 %s789_s8, 4  ;;  %s45_s11 = sshll.u32 %s790_s10, 4  ;;  %s23_s9 = int_to_ptr.vmem [resolvable:$true] %s22_s9  ;;  %s46_s11 = int_to_ptr.vmem [resolvable:$true] %s45_s11 }
  0x11   :  { %s706_s12 = scalar_lea.vmem %s23_s9, 64  ;;  %p711_p6 = scmp.lt.s32.totalorder %s23_s9, %s23_s9 }
  0x12   :  { %p707_p5 = scmp.ne.s32.totalorder %s23_s9, %s706_s12  ;;  %p712_p7 = scmp.lt.s32.totalorder %s706_s12, %s706_s12 }
  0x14   :  { %p713_p8 = por %p712_p7, %p711_p6 }
  0x16   :  { %p714_p9 = pnand %p713_p8, %p707_p5 }
  0x18   :  { %717 = shalt.err (!%p714_p9)
}
  0x19   :  { %25 = dma.hbm_to_vmem [thread:$0]  %s880_s0, 64, %s23_s9, [#allocation3]  }
  0x1a   :  { %s726_s15 = scalar_lea.vmem %s46_s11, 1024  ;;  %p731_p11 = scmp.lt.s32.totalorder %s46_s11, %s46_s11 }
  0x1b   :  { %p727_p10 = scmp.ne.s32.totalorder %s46_s11, %s726_s15  ;;  %p732_p12 = scmp.lt.s32.totalorder %s726_s15, %s726_s15 }
  0x1d   :  { %p733_p13 = por %p732_p12, %p731_p11 }
  0x1f   :  { %p734_p0 = pnand %p733_p13, %p727_p10 }
  0x21   :  { %737 = shalt.err (!%p734_p0)
}
  0x22   :  { %51 = dma.hbm_to_vmem [thread:$0]  %s883_s3, 1024, %s46_s11, [#allocation6], %s787_s27, %s787_s27, %s788_s28  }
  0x23   :  { %s791_s17 = smov [#allocation8]  }
  0x24   :  { %s59_s18 = sshll.u32 %s791_s17, 4  ;;  %s60_s18 = int_to_ptr.vmem [resolvable:$true] %s59_s18 }
  0x25   :  { %s746_s19 = scalar_lea.vmem %s60_s18, 2048  ;;  %p751_p2 = scmp.lt.s32.totalorder %s60_s18, %s60_s18 }
  0x26   :  { %p747_p1 = scmp.ne.s32.totalorder %s60_s18, %s746_s19  ;;  %p752_p3 = scmp.lt.s32.totalorder %s746_s19, %s746_s19 }
  0x28   :  { %p753_p4 = por %p752_p3, %p751_p2 }
  0x2a   :  { %p754_p5 = pnand %p753_p4, %p747_p1 }
  0x2c   :  { %757 = shalt.err (!%p754_p5)
}
  0x2d   :  { %s792_s0 = smov 128   ;;  %s793_s20 = smov 8  }
  0x2e   :  { %65 = dma.hbm_to_vmem [thread:$0]  %s885_s5, 2048, %s60_s18, [#allocation9], %s792_s0, %s792_s0, %s793_s20  }
  0x2f   :  { %778 = dma.done.wait [#allocation3], 64  }
  0x30   :  { %779 = vsyncadd [#allocation3], 4294967232 }
  0x31   :  { %780 = dma.done.wait [#allocation6], 2048  }
  0x32   :  { %781 = vsyncadd [#allocation6], 4294965248 }
  0x33   :  { %782 = dma.done.wait [#allocation9], 2048  }
  0x34   :  { %783 = vsyncadd [#allocation9], 4294965248  ;;  %v794_v0 = vmov 0.0   ;;  %vm795_vm0 = vmmov 0   ;;  %v626_v1 = vld [vmem:[#allocation5 + $0x38] sm:$0xff]   ;;  %v627_v2 = vld [vmem:[#allocation5 + $0x30] sm:$0xff]  }
  0x35   :  { %574 = vmatprep.subr.bf16.mxu0 %v794_v0  ;;  %590 = vmatprep.mubr.msk.bf16.mxu0 %vm795_vm0, %v794_v0  ;;  %v628_v3 = vld [vmem:[#allocation5 + $0x28] sm:$0xff]   ;;  %v629_v4 = vld [vmem:[#allocation5 + $0x20] sm:$0xff]   ;;  %v81_v5 = vld [vmem:[#allocation2] sm:$0xf]  ;;  %v796_v63 = vmov 0   ;;  %s797_s25 = smov [#allocation10]  }
  0x36   :  { %594 = vmatprep.subr.bf16.mxu1 %v794_v0  ;;  %610 = vmatprep.mubr.msk.bf16.mxu1 %vm795_vm0, %v794_v0  ;;  %v82_v6 = vunpack.c.l.bf16 %v81_v5  ;;  %v630_v8 = vld [vmem:[#allocation5 + $0x18] sm:$0xff]   ;;  %v631_v9 = vld [vmem:[#allocation5 + $0x10] sm:$0xff]   ;;  %v632_v12 = vld [vmem:[#allocation5 + $0x8] sm:$0xff]   ;;  %s506_s26 = sshll.u32 %s797_s25, 4  ;;  %s507_s26 = int_to_ptr.vmem [resolvable:$true] %s506_s26 }
  0x37   :  { %575 = vmatpush3.bf16.msra.mxu0 %v626_v1  ;;  %v633_v16 = vld [vmem:[#allocation5] sm:$0xff]   ;;  %v634_v20 = vld [vmem:[#allocation7 + $0x38] sm:$0xff]   ;;  %v635_v21 = vld [vmem:[#allocation7 + $0x30] sm:$0xff]   ;;  %s758_s27 = scalar_lea.vmem %s507_s26, 128  ;;  %p763_p7 = scmp.lt.s32.totalorder %s507_s26, %s507_s26 }
  0x38   :  { %576 = vmatprep.subr.bf16.mxu0 %v794_v0  ;;  %v83_v7 = vadd.f32 1.0, %v82_v6  ;;  %v86_v10 = vmul.f32 -0.5, %v82_v6  ;;  %v89_v13 = vand.u32 2147483647, %v82_v6  ;;  %595 = vmatpush3.bf16.msra.mxu1 %v634_v20  ;;  %v636_v22 = vld [vmem:[#allocation7 + $0x28] sm:$0xff]   ;;  %v637_v23 = vld [vmem:[#allocation7 + $0x20] sm:$0xff]   ;;  %p759_p6 = scmp.ne.s32.totalorder %s507_s26, %s758_s27  ;;  %p764_p8 = scmp.lt.s32.totalorder %s758_s27, %s758_s27 }
  0x39   :  { %596 = vmatprep.subr.bf16.mxu1 %v794_v0  ;;  %v638_v24 = vld [vmem:[#allocation7 + $0x18] sm:$0xff]   ;;  %v639_v25 = vld [vmem:[#allocation7 + $0x10] sm:$0xff]   ;;  %v640_v26 = vld [vmem:[#allocation7 + $0x8] sm:$0xff]  }
  0x3a   :  { %666 = vlog2.f32 %v83_v7  ;;  %v87_v11 = vadd.f32 1.0, %v86_v10  ;;  %vm90_vm1 = vcmp.lt.f32.partialorder %v89_v13, 0.0004427343  ;;  %v641_v27 = vld [vmem:[#allocation7] sm:$0xff]   ;;  %v517_v28 = vld [vmem:[%s882_s2] ss:$0 sm:$0xff]  ;;  %p765_p9 = por %p764_p8, %p763_p7 }
  0x3b   :  { %577 = vmatpush3.bf16.msra.mxu0 %v627_v2  ;;  %v644_v47 = vld [vmem:[#allocation8 + $0x74] ss:$8 sps:$4 sm:$0xff]   ;;  %v642_v48 = vld [vmem:[#allocation8 + $0x70] ss:$8 sps:$4 sm:$0xff]   ;;  %v647_v49 = vld [vmem:[#allocation8 + $0x64] ss:$8 sps:$4 sm:$0xff]  }
  0x3c   :  { %578 = vmatprep.subr.bf16.mxu0 %v794_v0  ;;  %v88_v14 = vmul.f32 %v87_v11, %v82_v6  ;;  %597 = vmatpush3.bf16.msra.mxu1 %v635_v21  ;;  %v645_v50 = vld [vmem:[#allocation8 + $0x60] ss:$8 sps:$4 sm:$0xff]   ;;  %v650_v51 = vld [vmem:[#allocation8 + $0x54] ss:$8 sps:$4 sm:$0xff]   ;;  %v648_v52 = vld [vmem:[#allocation8 + $0x50] ss:$8 sps:$4 sm:$0xff]   ;;  %p766_p10 = pnand %p765_p9, %p759_p6 }
  0x3d   :  { %598 = vmatprep.subr.bf16.mxu1 %v794_v0  ;;  %v653_v53 = vld [vmem:[#allocation8 + $0x44] ss:$8 sps:$4 sm:$0xff]   ;;  %v651_v54 = vld [vmem:[#allocation8 + $0x40] ss:$8 sps:$4 sm:$0xff]   ;;  %v656_v55 = vld [vmem:[#allocation8 + $0x34] ss:$8 sps:$4 sm:$0xff]  }
  0x3e   :  { %v654_v56 = vld [vmem:[#allocation8 + $0x30] ss:$8 sps:$4 sm:$0xff]   ;;  %v659_v57 = vld [vmem:[#allocation8 + $0x24] ss:$8 sps:$4 sm:$0xff]   ;;  %v657_v58 = vld [vmem:[#allocation8 + $0x20] ss:$8 sps:$4 sm:$0xff]  }
  0x3f   :  { %579 = vmatpush3.bf16.msra.mxu0 %v628_v3  ;;  %v662_v59 = vld [vmem:[#allocation8 + $0x14] ss:$8 sps:$4 sm:$0xff]   ;;  %v660_v60 = vld [vmem:[#allocation8 + $0x10] ss:$8 sps:$4 sm:$0xff]   ;;  %v665_v61 = vld [vmem:[#allocation8 + $0x4] ss:$8 sps:$4 sm:$0xff]  }
  0x40   :  { %580 = vmatprep.subr.bf16.mxu0 %v794_v0  ;;  %599 = vmatpush3.bf16.msra.mxu1 %v636_v22  ;;  %v663_v62 = vld [vmem:[#allocation8] ss:$8 sps:$4 sm:$0xff]   ;;  %v361_v22 = vld [vmem:[%s886_s6] sm:$0x3] }
  0x41   :  { %600 = vmatprep.subr.bf16.mxu1 %v794_v0 }
  0x43   :  { %581 = vmatpush3.bf16.msra.mxu0 %v629_v4 }
  0x44   :  { %582 = vmatprep.subr.bf16.mxu0 %v794_v0  ;;  %601 = vmatpush3.bf16.msra.mxu1 %v637_v23 }
  0x45   :  { %602 = vmatprep.subr.bf16.mxu1 %v794_v0 }
  0x47   :  { %583 = vmatpush3.bf16.msra.mxu0 %v630_v8  ;;  %v667_v15 = vpop.eup %666 }
  0x48   :  { %584 = vmatprep.subr.bf16.mxu0 %v794_v0  ;;  %v85_v17 = vmul.f32 0.6931472, %v667_v15  ;;  %603 = vmatpush3.bf16.msra.mxu1 %v638_v24 }
  0x49   :  { %604 = vmatprep.subr.bf16.mxu1 %v794_v0 }
  0x4a   :  { %v91_v18 = vsel %vm90_vm1, %v88_v14, %v85_v17 }
  0x4b   :  { %585 = vmatpush3.bf16.msra.mxu0 %v631_v9  ;;  %v92_v19 = vpack.c.bf16 %v91_v18, %v91_v18 }
  0x4c   :  { %586 = vmatprep.subr.bf16.mxu0 %v794_v0  ;;  %605 = vmatpush3.bf16.msra.mxu1 %v639_v25 }
  0x4d   :  { %606 = vmatprep.subr.bf16.mxu1 %v794_v0 }
  0x4f   :  { %587 = vmatpush3.bf16.msra.mxu0 %v632_v12 }
  0x50   :  { %588 = vmatprep.subr.bf16.mxu0 %v794_v0  ;;  %607 = vmatpush3.bf16.msra.mxu1 %v640_v26 }
  0x51   :  { %608 = vmatprep.subr.bf16.mxu1 %v794_v0  ;;  %v526_v0 = vld [vmem:[%s884_s4] ss:$0 sm:$0xff] }
  0x53   :  { %589 = vmatpush3.bf16.msra.mxu0 %v633_v16 }
  0x54   :  { %609 = vmatpush3.bf16.msra.mxu1 %v641_v27  ;;  %453 = vmatprep.subr.bf16.mxu0 %v644_v47 }
  0x56   :  { %591 = vmatmul.mubr.bf16.vlgmr.msra.gmra.mxu0 %v92_v19  ;;  %v363_v19 = vlaneseq }
  0x57   :  { %454 = vmatpush1.bf16.msra.mxu0 %v642_v48  ;;  %485 = vmatprep.mubr.bf16.mxu0 %v796_v63 }
  0x58   :  { %455 = vmatprep.subr.bf16.mxu0 %v647_v49  ;;  %v364_v20 = vshrl.u32 %v363_v19, 7 }
  0x5a   :  { %v369_v21 = vsub.s32 1, %v364_v20 }
  0x5b   :  { %456 = vmatpush1.bf16.msra.mxu0 %v645_v50 }
  0x5c   :  { %457 = vmatprep.subr.bf16.mxu0 %v650_v51  ;;  %v370_v23 = vrot.slane %v361_v22, %v369_v21 }
  0x5f   :  { %458 = vmatpush1.bf16.msra.mxu0 %v648_v52 }
  0x60   :  { %459 = vmatprep.subr.bf16.mxu0 %v653_v53 }
  0x63   :  { %460 = vmatpush1.bf16.msra.mxu0 %v651_v54 }
  0x64   :  { %461 = vmatprep.subr.bf16.mxu0 %v656_v55 }
  0x67   :  { %462 = vmatpush1.bf16.msra.mxu0 %v654_v56 }
  0x68   :  { %463 = vmatprep.subr.bf16.mxu0 %v659_v57 }
  0x6b   :  { %464 = vmatpush1.bf16.msra.mxu0 %v657_v58 }
  0x6c   :  { %465 = vmatprep.subr.bf16.mxu0 %v662_v59 }
  0x6f   :  { %466 = vmatpush1.bf16.msra.mxu0 %v660_v60 }
  0x70   :  { %467 = vmatprep.subr.bf16.mxu0 %v665_v61 }
  0x73   :  { %468 = vmatpush1.bf16.msra.mxu0 %v663_v62 }
 0x116   :  { %v198_v29 = vpop.f32.mrf.mxu0 }
 0x117   :  { %v199_v30 = vadd.f32 %v517_v28, %v198_v29 }
 0x118   :  { %v592_v31 = vpop.f32.mrf.mxu0 }
 0x119   :  { %v205_v32 = vmin.f32 %v199_v30, 20.0  ;;  %vm204_vm3 = vcmp.gt.f32.partialorder %v199_v30, 20.0 }
 0x11a   :  { %v201_v33 = vpop.f32.mrf.mxu0 }
 0x11b   :  { %v206_v34 = vmul.f32 1.442695, %v205_v32 }
 0x11c   :  { %v593_v35 = vpop.f32.mrf.mxu0 }
 0x11d   :  { %668 = vpow2.f32 %v206_v34 }
 0x12a   :  { %v669_v36 = vpop.eup %668 }
 0x12b   :  { %v208_v37 = vadd.f32 1.0, %v669_v36  ;;  %v211_v38 = vmul.f32 -0.5, %v669_v36  ;;  %v214_v40 = vand.u32 2147483647, %v669_v36 }
 0x12d   :  { %670 = vlog2.f32 %v208_v37  ;;  %v212_v39 = vadd.f32 1.0, %v211_v38  ;;  %vm215_vm2 = vcmp.lt.f32.partialorder %v214_v40, 0.0004427343 }
 0x12f   :  { %v213_v43 = vmul.f32 %v669_v36, %v212_v39 }
 0x13a   :  { %v671_v41 = vpop.eup %670 }
 0x13b   :  { %v210_v42 = vmul.f32 0.6931472, %v671_v41 }
 0x13d   :  { %v216_v44 = vsel %vm215_vm2, %v213_v43, %v210_v42 }
 0x13e   :  { %v217_v45 = vsel %vm204_vm3, %v199_v30, %v216_v44  ;;  %v365_v30 = vsub.s32 0, %v364_v20 }
 0x13f   :  { %v218_v46 = vpack.c.bf16 %v217_v45, %v217_v45 }
 0x140   :  { %v366_v31 = vrot.slane %v361_v22, %v365_v30 }
 0x141   :  { %611 = vmatmul.mubr.bf16.vlgmr.msra.gmra.mxu1 %v218_v46 }
 0x201   :  { %v324_v1 = vpop.f32.mrf.mxu1 }
 0x202   :  { %v325_v2 = vadd.f32 %v526_v0, %v324_v1 }
 0x203   :  { %v612_v3 = vpop.f32.mrf.mxu1 }
 0x204   :  { %v331_v4 = vmin.f32 %v325_v2, 20.0  ;;  %vm330_vm5 = vcmp.gt.f32.partialorder %v325_v2, 20.0 }
 0x205   :  { %v327_v5 = vpop.f32.mrf.mxu1 }
 0x206   :  { %v332_v6 = vmul.f32 1.442695, %v331_v4 }
 0x207   :  { %v613_v7 = vpop.f32.mrf.mxu1 }
 0x208   :  { %672 = vpow2.f32 %v332_v6 }
 0x215   :  { %v673_v8 = vpop.eup %672 }
 0x216   :  { %v334_v9 = vadd.f32 1.0, %v673_v8  ;;  %v337_v10 = vmul.f32 -0.5, %v673_v8  ;;  %v340_v12 = vand.u32 2147483647, %v673_v8 }
 0x218   :  { %674 = vlog2.f32 %v334_v9  ;;  %v338_v11 = vadd.f32 1.0, %v337_v10  ;;  %vm341_vm4 = vcmp.lt.f32.partialorder %v340_v12, 0.0004427343 }
 0x21a   :  { %v339_v15 = vmul.f32 %v673_v8, %v338_v11 }
 0x225   :  { %v675_v13 = vpop.eup %674 }
 0x226   :  { %v336_v14 = vmul.f32 0.6931472, %v675_v13 }
 0x228   :  { %v342_v16 = vsel %vm341_vm4, %v339_v15, %v336_v14 }
 0x229   :  { %v343_v17 = vsel %vm330_vm5, %v325_v2, %v342_v16 }
 0x22a   :  { %v344_v18 = vpack.c.bf16 %v343_v17, %v343_v17 }
 0x22c   :  { %486 = vmatmul.mubr.bf16.vlgmr.msra.gmra.mxu0 %v344_v18 }
 0x2ec   :  { %v487_v24 = vpop.f32.mrf.mxu0 }
 0x2ed   :  { %v488_v32 = vadd.f32 %v487_v24, %v366_v31 }
 0x2ee   :  { %v489_v25 = vpop.f32.mrf.mxu0 }
 0x2ef   :  { %v490_v26 = vadd.f32 %v489_v25, %v370_v23 }
 0x2f0   :  { %v491_v27 = vpop.f32.mrf.mxu0 }
 0x2f1   :  { %v496_v28 = vmul.f32 1.442695, %v490_v26 }
 0x2f2   :  { %v492_v29 = vpop.f32.mrf.mxu0 }
 0x2f3   :  { %676 = vpow2.f32 %v496_v28 }
 0x300   :  { %v677_v33 = vpop.eup %676 }
 0x301   :  { %v554_v34 = vpack.c.bf16 %v677_v33, %v488_v32 }
 0x303   :  { %555 = vst [vmem:[#allocation10] sm:$0xff] %v554_v34  }
 0x304   :  { %769 = shalt.err (!%p766_p10)
}
 0x305   :  { %509 = dma.vmem_to_hbm [thread:$0]  %s507_s26, 128, %s887_s7, [#allocation4]  }
 0x306   :  { %784 = dma.done.wait [#allocation4], 128  }
 0x307   :  { %785 = vsyncadd [#allocation4], 4294967168 }
 0x308   :  { %513 = vsyncpa [#allocation3], 1 }
 0x309   :  { %514 = vsyncpa [#allocation6], 1 }
 0x30a   :  { %515 = vsyncpa [#allocation9], 1 }
 0x30b   :  { %516 = vsyncpa [#allocation4], 1 }

// kernel: tpu_custom_call.1
= control target key start
LH: loop header
LB: loop body
LE: loop exit
PB: predicated region body
PF: predicated region fallthrough
CT: control target
= control target key end

     0   :  { %12 = vsyncpa [#allocation3], 0  ;;  %s880_s0 = inlined_call_operand.hbm [shape: bf16[8,128], index: 0, kind: input, shape index: {}]   ;;  %s881_s1 = inlined_call_operand.hbm [shape: bf16[128,128], index: 1, kind: input, shape index: {}]   ;;  %s882_s2 = inlined_call_operand.vmem [shape: f32[1,128], index: 2, kind: input, shape index: {}]   ;;  %s883_s3 = inlined_call_operand.hbm [shape: bf16[128,128], index: 3, kind: input, shape index: {}]   ;;  %s884_s4 = inlined_call_operand.vmem [shape: f32[1,128], index: 4, kind: input, shape index: {}]   ;;  %s885_s5 = inlined_call_operand.hbm [shape: bf16[128,256], index: 5, kind: input, shape index: {}]   ;;  %s886_s6 = inlined_call_operand.vmem [shape: f32[1,256], index: 6, kind: input, shape index: {}]   ;;  %s887_s7 = inlined_call_operand.hbm [shape: bf16[8,256], index: 7, kind: output, shape index: {}]  }
   0x1   :  { %13 = vsyncpa [#allocation6], 0 }
   0x2   :  { %14 = vsyncpa [#allocation9], 0 }
   0x3   :  { %15 = vsyncpa [#allocation4], 0  ;;  %s786_s24 = smov [#allocation5]  }
   0x4   :  { %s31_s25 = sshll.u32 %s786_s24, 4  ;;  %s32_s25 = int_to_ptr.vmem [resolvable:$true] %s31_s25 }
   0x5   :  { %s686_s26 = scalar_lea.vmem %s32_s25, 1024  ;;  %p691_p1 = scmp.lt.s32.totalorder %s32_s25, %s32_s25 }
   0x6   :  { %p687_p0 = scmp.ne.s32.totalorder %s32_s25, %s686_s26  ;;  %p692_p2 = scmp.lt.s32.totalorder %s686_s26, %s686_s26 }
   0x8   :  { %p693_p3 = por %p692_p2, %p691_p1 }
   0xa   :  { %p694_p4 = pnand %p693_p3, %p687_p0 }
   0xc   :  { %697 = shalt.err (!%p694_p4)
}
   0xd   :  { %s787_s27 = smov 64   ;;  %s788_s28 = smov 4  }
   0xe   :  { %37 = dma.hbm_to_vmem [thread:$0]  %s881_s1, 1024, %s32_s25, [#allocation6], %s787_s27, %s787_s27, %s788_s28  }
   0xf   :  { %s789_s8 = smov [#allocation2]   ;;  %s790_s10 = smov [#allocation7]  }
  0x10   :  { %s22_s9 = sshll.u32 %s789_s8, 4  ;;  %s45_s11 = sshll.u32 %s790_s10, 4  ;;  %s23_s9 = int_to_ptr.vmem [resolvable:$true] %s22_s9  ;;  %s46_s11 = int_to_ptr.vmem [resolvable:$true] %s45_s11 }
  0x11   :  { %s706_s12 = scalar_lea.vmem %s23_s9, 64  ;;  %p711_p6 = scmp.lt.s32.totalorder %s23_s9, %s23_s9 }
  0x12   :  { %p707_p5 = scmp.ne.s32.totalorder %s23_s9, %s706_s12  ;;  %p712_p7 = scmp.lt.s32.totalorder %s706_s12, %s706_s12 }
  0x14   :  { %p713_p8 = por %p712_p7, %p711_p6 }
  0x16   :  { %p714_p9 = pnand %p713_p8, %p707_p5 }
  0x18   :  { %717 = shalt.err (!%p714_p9)
}
  0x19   :  { %25 = dma.hbm_to_vmem [thread:$0]  %s880_s0, 64, %s23_s9, [#allocation3]  }
  0x1a   :  { %s726_s15 = scalar_lea.vmem %s46_s11, 1024  ;;  %p731_p11 = scmp.lt.s32.totalorder %s46_s11, %s46_s11 }
  0x1b   :  { %p727_p10 = scmp.ne.s32.totalorder %s46_s11, %s726_s15  ;;  %p732_p12 = scmp.lt.s32.totalorder %s726_s15, %s726_s15 }
  0x1d   :  { %p733_p13 = por %p732_p12, %p731_p11 }
  0x1f   :  { %p734_p0 = pnand %p733_p13, %p727_p10 }
  0x21   :  { %737 = shalt.err (!%p734_p0)
}
  0x22   :  { %51 = dma.hbm_to_vmem [thread:$0]  %s883_s3, 1024, %s46_s11, [#allocation6], %s787_s27, %s787_s27, %s788_s28  }
  0x23   :  { %s791_s17 = smov [#allocation8]  }
  0x24   :  { %s59_s18 = sshll.u32 %s791_s17, 4  ;;  %s60_s18 = int_to_ptr.vmem [resolvable:$true] %s59_s18 }
  0x25   :  { %s746_s19 = scalar_lea.vmem %s60_s18, 2048  ;;  %p751_p2 = scmp.lt.s32.totalorder %s60_s18, %s60_s18 }
  0x26   :  { %p747_p1 = scmp.ne.s32.totalorder %s60_s18, %s746_s19  ;;  %p752_p3 = scmp.lt.s32.totalorder %s746_s19, %s746_s19 }
  0x28   :  { %p753_p4 = por %p752_p3, %p751_p2 }
  0x2a   :  { %p754_p5 = pnand %p753_p4, %p747_p1 }
  0x2c   :  { %757 = shalt.err (!%p754_p5)
}
  0x2d   :  { %s792_s0 = smov 128   ;;  %s793_s20 = smov 8  }
  0x2e   :  { %65 = dma.hbm_to_vmem [thread:$0]  %s885_s5, 2048, %s60_s18, [#allocation9], %s792_s0, %s792_s0, %s793_s20  }
  0x2f   :  { %778 = dma.done.wait [#allocation3], 64  }
  0x30   :  { %779 = vsyncadd [#allocation3], 4294967232 }
  0x31   :  { %780 = dma.done.wait [#allocation6], 2048  }
  0x32   :  { %781 = vsyncadd [#allocation6], 4294965248 }
  0x33   :  { %782 = dma.done.wait [#allocation9], 2048  }
  0x34   :  { %783 = vsyncadd [#allocation9], 4294965248  ;;  %v794_v0 = vmov 0.0   ;;  %vm795_vm0 = vmmov 0   ;;  %v626_v1 = vld [vmem:[#allocation5 + $0x38] sm:$0xff]   ;;  %v627_v2 = vld [vmem:[#allocation5 + $0x30] sm:$0xff]  }
  0x35   :  { %574 = vmatprep.subr.bf16.mxu0 %v794_v0  ;;  %590 = vmatprep.mubr.msk.bf16.mxu0 %vm795_vm0, %v794_v0  ;;  %v628_v3 = vld [vmem:[#allocation5 + $0x28] sm:$0xff]   ;;  %v629_v4 = vld [vmem:[#allocation5 + $0x20] sm:$0xff]   ;;  %v81_v5 = vld [vmem:[#allocation2] sm:$0xf]  ;;  %v796_v63 = vmov 0   ;;  %s797_s25 = smov [#allocation10]  }
  0x36   :  { %594 = vmatprep.subr.bf16.mxu1 %v794_v0  ;;  %610 = vmatprep.mubr.msk.bf16.mxu1 %vm795_vm0, %v794_v0  ;;  %v82_v6 = vunpack.c.l.bf16 %v81_v5  ;;  %v630_v8 = vld [vmem:[#allocation5 + $0x18] sm:$0xff]   ;;  %v631_v9 = vld [vmem:[#allocation5 + $0x10] sm:$0xff]   ;;  %v632_v12 = vld [vmem:[#allocation5 + $0x8] sm:$0xff]   ;;  %s506_s26 = sshll.u32 %s797_s25, 4  ;;  %s507_s26 = int_to_ptr.vmem [resolvable:$true] %s506_s26 }
  0x37   :  { %575 = vmatpush3.bf16.msra.mxu0 %v626_v1  ;;  %v633_v16 = vld [vmem:[#allocation5] sm:$0xff]   ;;  %v634_v20 = vld [vmem:[#allocation7 + $0x38] sm:$0xff]   ;;  %v635_v21 = vld [vmem:[#allocation7 + $0x30] sm:$0xff]   ;;  %s758_s27 = scalar_lea.vmem %s507_s26, 128  ;;  %p763_p7 = scmp.lt.s32.totalorder %s507_s26, %s507_s26 }
  0x38   :  { %576 = vmatprep.subr.bf16.mxu0 %v794_v0  ;;  %v83_v7 = vadd.f32 1.0, %v82_v6  ;;  %v86_v10 = vmul.f32 -0.5, %v82_v6  ;;  %v89_v13 = vand.u32 2147483647, %v82_v6  ;;  %595 = vmatpush3.bf16.msra.mxu1 %v634_v20  ;;  %v636_v22 = vld [vmem:[#allocation7 + $0x28] sm:$0xff]   ;;  %v637_v23 = vld [vmem:[#allocation7 + $0x20] sm:$0xff]   ;;  %p759_p6 = scmp.ne.s32.totalorder %s507_s26, %s758_s27  ;;  %p764_p8 = scmp.lt.s32.totalorder %s758_s27, %s758_s27 }
  0x39   :  { %596 = vmatprep.subr.bf16.mxu1 %v794_v0  ;;  %v638_v24 = vld [vmem:[#allocation7 + $0x18] sm:$0xff]   ;;  %v639_v25 = vld [vmem:[#allocation7 + $0x10] sm:$0xff]   ;;  %v640_v26 = vld [vmem:[#allocation7 + $0x8] sm:$0xff]  }
  0x3a   :  { %666 = vlog2.f32 %v83_v7  ;;  %v87_v11 = vadd.f32 1.0, %v86_v10  ;;  %vm90_vm1 = vcmp.lt.f32.partialorder %v89_v13, 0.0004427343  ;;  %v641_v27 = vld [vmem:[#allocation7] sm:$0xff]   ;;  %v517_v28 = vld [vmem:[%s882_s2] ss:$0 sm:$0xff]  ;;  %p765_p9 = por %p764_p8, %p763_p7 }
  0x3b   :  { %577 = vmatpush3.bf16.msra.mxu0 %v627_v2  ;;  %v644_v47 = vld [vmem:[#allocation8 + $0x74] ss:$8 sps:$4 sm:$0xff]   ;;  %v642_v48 = vld [vmem:[#allocation8 + $0x70] ss:$8 sps:$4 sm:$0xff]   ;;  %v647_v49 = vld [vmem:[#allocation8 + $0x64] ss:$8 sps:$4 sm:$0xff]  }
  0x3c   :  { %578 = vmatprep.subr.bf16.mxu0 %v794_v0  ;;  %v88_v14 = vmul.f32 %v87_v11, %v82_v6  ;;  %597 = vmatpush3.bf16.msra.mxu1 %v635_v21  ;;  %v645_v50 = vld [vmem:[#allocation8 + $0x60] ss:$8 sps:$4 sm:$0xff]   ;;  %v650_v51 = vld [vmem:[#allocation8 + $0x54] ss:$8 sps:$4 sm:$0xff]   ;;  %v648_v52 = vld [vmem:[#allocation8 + $0x50] ss:$8 sps:$4 sm:$0xff]   ;;  %p766_p10 = pnand %p765_p9, %p759_p6 }
  0x3d   :  { %598 = vmatprep.subr.bf16.mxu1 %v794_v0  ;;  %v653_v53 = vld [vmem:[#allocation8 + $0x44] ss:$8 sps:$4 sm:$0xff]   ;;  %v651_v54 = vld [vmem:[#allocation8 + $0x40] ss:$8 sps:$4 sm:$0xff]   ;;  %v656_v55 = vld [vmem:[#allocation8 + $0x34] ss:$8 sps:$4 sm:$0xff]  }
  0x3e   :  { %v654_v56 = vld [vmem:[#allocation8 + $0x30] ss:$8 sps:$4 sm:$0xff]   ;;  %v659_v57 = vld [vmem:[#allocation8 + $0x24] ss:$8 sps:$4 sm:$0xff]   ;;  %v657_v58 = vld [vmem:[#allocation8 + $0x20] ss:$8 sps:$4 sm:$0xff]  }
  0x3f   :  { %579 = vmatpush3.bf16.msra.mxu0 %v628_v3  ;;  %v662_v59 = vld [vmem:[#allocation8 + $0x14] ss:$8 sps:$4 sm:$0xff]   ;;  %v660_v60 = vld [vmem:[#allocation8 + $0x10] ss:$8 sps:$4 sm:$0xff]   ;;  %v665_v61 = vld [vmem:[#allocation8 + $0x4] ss:$8 sps:$4 sm:$0xff]  }
  0x40   :  { %580 = vmatprep.subr.bf16.mxu0 %v794_v0  ;;  %599 = vmatpush3.bf16.msra.mxu1 %v636_v22  ;;  %v663_v62 = vld [vmem:[#allocation8] ss:$8 sps:$4 sm:$0xff]   ;;  %v361_v22 = vld [vmem:[%s886_s6] sm:$0x3] }
  0x41   :  { %600 = vmatprep.subr.bf16.mxu1 %v794_v0 }
  0x43   :  { %581 = vmatpush3.bf16.msra.mxu0 %v629_v4 }
  0x44   :  { %582 = vmatprep.subr.bf16.mxu0 %v794_v0  ;;  %601 = vmatpush3.bf16.msra.mxu1 %v637_v23 }
  0x45   :  { %602 = vmatprep.subr.bf16.mxu1 %v794_v0 }
  0x47   :  { %583 = vmatpush3.bf16.msra.mxu0 %v630_v8  ;;  %v667_v15 = vpop.eup %666 }
  0x48   :  { %584 = vmatprep.subr.bf16.mxu0 %v794_v0  ;;  %v85_v17 = vmul.f32 0.6931472, %v667_v15  ;;  %603 = vmatpush3.bf16.msra.mxu1 %v638_v24 }
  0x49   :  { %604 = vmatprep.subr.bf16.mxu1 %v794_v0 }
  0x4a   :  { %v91_v18 = vsel %vm90_vm1, %v88_v14, %v85_v17 }
  0x4b   :  { %585 = vmatpush3.bf16.msra.mxu0 %v631_v9  ;;  %v92_v19 = vpack.c.bf16 %v91_v18, %v91_v18 }
  0x4c   :  { %586 = vmatprep.subr.bf16.mxu0 %v794_v0  ;;  %605 = vmatpush3.bf16.msra.mxu1 %v639_v25 }
  0x4d   :  { %606 = vmatprep.subr.bf16.mxu1 %v794_v0 }
  0x4f   :  { %587 = vmatpush3.bf16.msra.mxu0 %v632_v12 }
  0x50   :  { %588 = vmatprep.subr.bf16.mxu0 %v794_v0  ;;  %607 = vmatpush3.bf16.msra.mxu1 %v640_v26 }
  0x51   :  { %608 = vmatprep.subr.bf16.mxu1 %v794_v0  ;;  %v526_v0 = vld [vmem:[%s884_s4] ss:$0 sm:$0xff] }
  0x53   :  { %589 = vmatpush3.bf16.msra.mxu0 %v633_v16 }
  0x54   :  { %609 = vmatpush3.bf16.msra.mxu1 %v641_v27  ;;  %453 = vmatprep.subr.bf16.mxu0 %v644_v47 }
  0x56   :  { %591 = vmatmul.mubr.bf16.vlgmr.msra.gmra.mxu0 %v92_v19  ;;  %v363_v19 = vlaneseq }
  0x57   :  { %454 = vmatpush1.bf16.msra.mxu0 %v642_v48  ;;  %485 = vmatprep.mubr.bf16.mxu0 %v796_v63 }
  0x58   :  { %455 = vmatprep.subr.bf16.mxu0 %v647_v49  ;;  %v364_v20 = vshrl.u32 %v363_v19, 7 }
  0x5a   :  { %v369_v21 = vsub.s32 1, %v364_v20 }
  0x5b   :  { %456 = vmatpush1.bf16.msra.mxu0 %v645_v50 }
  0x5c   :  { %457 = vmatprep.subr.bf16.mxu0 %v650_v51  ;;  %v370_v23 = vrot.slane %v361_v22, %v369_v21 }
  0x5f   :  { %458 = vmatpush1.bf16.msra.mxu0 %v648_v52 }
  0x60   :  { %459 = vmatprep.subr.bf16.mxu0 %v653_v53 }
  0x63   :  { %460 = vmatpush1.bf16.msra.mxu0 %v651_v54 }
  0x64   :  { %461 = vmatprep.subr.bf16.mxu0 %v656_v55 }
  0x67   :  { %462 = vmatpush1.bf16.msra.mxu0 %v654_v56 }
  0x68   :  { %463 = vmatprep.subr.bf16.mxu0 %v659_v57 }
  0x6b   :  { %464 = vmatpush1.bf16.msra.mxu0 %v657_v58 }
  0x6c   :  { %465 = vmatprep.subr.bf16.mxu0 %v662_v59 }
  0x6f   :  { %466 = vmatpush1.bf16.msra.mxu0 %v660_v60 }
  0x70   :  { %467 = vmatprep.subr.bf16.mxu0 %v665_v61 }
  0x73   :  { %468 = vmatpush1.bf16.msra.mxu0 %v663_v62 }
 0x116   :  { %v198_v29 = vpop.f32.mrf.mxu0 }
 0x117   :  { %v199_v30 = vadd.f32 %v517_v28, %v198_v29 }
 0x118   :  { %v592_v31 = vpop.f32.mrf.mxu0 }
 0x119   :  { %v205_v32 = vmin.f32 %v199_v30, 20.0  ;;  %vm204_vm3 = vcmp.gt.f32.partialorder %v199_v30, 20.0 }
 0x11a   :  { %v201_v33 = vpop.f32.mrf.mxu0 }
 0x11b   :  { %v206_v34 = vmul.f32 1.442695, %v205_v32 }
 0x11c   :  { %v593_v35 = vpop.f32.mrf.mxu0 }
 0x11d   :  { %668 = vpow2.f32 %v206_v34 }
 0x12a   :  { %v669_v36 = vpop.eup %668 }
 0x12b   :  { %v208_v37 = vadd.f32 1.0, %v669_v36  ;;  %v211_v38 = vmul.f32 -0.5, %v669_v36  ;;  %v214_v40 = vand.u32 2147483647, %v669_v36 }
 0x12d   :  { %670 = vlog2.f32 %v208_v37  ;;  %v212_v39 = vadd.f32 1.0, %v211_v38  ;;  %vm215_vm2 = vcmp.lt.f32.partialorder %v214_v40, 0.0004427343 }
 0x12f   :  { %v213_v43 = vmul.f32 %v669_v36, %v212_v39 }
 0x13a   :  { %v671_v41 = vpop.eup %670 }
 0x13b   :  { %v210_v42 = vmul.f32 0.6931472, %v671_v41 }
 0x13d   :  { %v216_v44 = vsel %vm215_vm2, %v213_v43, %v210_v42 }
 0x13e   :  { %v217_v45 = vsel %vm204_vm3, %v199_v30, %v216_v44  ;;  %v365_v30 = vsub.s32 0, %v364_v20 }
 0x13f   :  { %v218_v46 = vpack.c.bf16 %v217_v45, %v217_v45 }
 0x140   :  { %v366_v31 = vrot.slane %v361_v22, %v365_v30 }
 0x141   :  { %611 = vmatmul.mubr.bf16.vlgmr.msra.gmra.mxu1 %v218_v46 }
 0x201   :  { %v324_v1 = vpop.f32.mrf.mxu1 }
 0x202   :  { %v325_v2 = vadd.f32 %v526_v0, %v324_v1 }
 0x203   :  { %v612_v3 = vpop.f32.mrf.mxu1 }
 0x204   :  { %v331_v4 = vmin.f32 %v325_v2, 20.0  ;;  %vm330_vm5 = vcmp.gt.f32.partialorder %v325_v2, 20.0 }
 0x205   :  { %v327_v5 = vpop.f32.mrf.mxu1 }
 0x206   :  { %v332_v6 = vmul.f32 1.442695, %v331_v4 }
 0x207   :  { %v613_v7 = vpop.f32.mrf.mxu1 }
 0x208   :  { %672 = vpow2.f32 %v332_v6 }
 0x215   :  { %v673_v8 = vpop.eup %672 }
 0x216   :  { %v334_v9 = vadd.f32 1.0, %v673_v8  ;;  %v337_v10 = vmul.f32 -0.5, %v673_v8  ;;  %v340_v12 = vand.u32 2147483647, %v673_v8 }
 0x218   :  { %674 = vlog2.f32 %v334_v9  ;;  %v338_v11 = vadd.f32 1.0, %v337_v10  ;;  %vm341_vm4 = vcmp.lt.f32.partialorder %v340_v12, 0.0004427343 }
 0x21a   :  { %v339_v15 = vmul.f32 %v673_v8, %v338_v11 }
 0x225   :  { %v675_v13 = vpop.eup %674 }
 0x226   :  { %v336_v14 = vmul.f32 0.6931472, %v675_v13 }
 0x228   :  { %v342_v16 = vsel %vm341_vm4, %v339_v15, %v336_v14 }
 0x229   :  { %v343_v17 = vsel %vm330_vm5, %v325_v2, %v342_v16 }
 0x22a   :  { %v344_v18 = vpack.c.bf16 %v343_v17, %v343_v17 }
 0x22c   :  { %486 = vmatmul.mubr.bf16.vlgmr.msra.gmra.mxu0 %v344_v18 }
 0x2ec   :  { %v487_v24 = vpop.f32.mrf.mxu0 }
 0x2ed   :  { %v488_v32 = vadd.f32 %v487_v24, %v366_v31 }
 0x2ee   :  { %v489_v25 = vpop.f32.mrf.mxu0 }
 0x2ef   :  { %v490_v26 = vadd.f32 %v489_v25, %v370_v23 }
 0x2f0   :  { %v491_v27 = vpop.f32.mrf.mxu0 }
 0x2f1   :  { %v496_v28 = vmul.f32 1.442695, %v490_v26 }
 0x2f2   :  { %v492_v29 = vpop.f32.mrf.mxu0 }
 0x2f3   :  { %676 = vpow2.f32 %v496_v28 }
 0x300   :  { %v677_v33 = vpop.eup %676 }
 0x301   :  { %v554_v34 = vpack.c.bf16 %v677_v33, %v488_v32 }
 0x303   :  { %555 = vst [vmem:[#allocation10] sm:$0xff] %v554_v34  }
 0x304   :  { %769 = shalt.err (!%p766_p10)
}
 0x305   :  { %509 = dma.vmem_to_hbm [thread:$0]  %s507_s26, 128, %s887_s7, [#allocation4]  }
 0x306   :  { %784 = dma.done.wait [#allocation4], 128  }
 0x307   :  { %785 = vsyncadd [#allocation4], 4294967168 }
 0x308   :  { %513 = vsyncpa [#allocation3], 1 }
 0x309   :  { %514 = vsyncpa [#allocation6], 1 }
 0x30a   :  { %515 = vsyncpa [#allocation9], 1 }
 0x30b   :  { %516 = vsyncpa [#allocation4], 1 }

</bundles_post_ra>
